<compile_context>
chip_gen: v7x
topology: tpu7x:2x2x1
jax: 0.10.0
libtpu: 0.0.40
codegen_flags: <defaults>
</compile_context>

<pallas_src>
import functools

import jax
import jax.numpy as jnp
from jax.experimental import pallas as pl
from jax.experimental.pallas import tpu as pltpu  # noqa: F401  (TPU backend assumed)

BN_EPS = 1e-5


def _encoder_kernel(si_ref, warm_ref, w_in_si_ref, w_in_warm_ref, w_heads_ref,
                    misc_ref, out_ref, *, latent_dim, z_size):
    si = si_ref[...]        # (B, si_dim)
    warm = warm_ref[...]    # (B, z_size)
    misc = misc_ref[...]    # (4, latent_dim + 2*z_size)

    z2 = 2 * z_size

    # Fused input-side matmul (2 MXU pushes):
    #   cols [0, latent_dim)      -> fc pre-activation (bias-free; misc row0 holds zeros there)
    #   cols [latent_dim, wide)   -> mu_zgc | logvar_zgc  (their biases live in misc row0)
    fused = (
        jnp.dot(si, w_in_si_ref[...], preferred_element_type=jnp.float32)
        + jnp.dot(warm, w_in_warm_ref[...], preferred_element_type=jnp.float32)
        + misc[0:1, :]
    )                                                     # (B, latent_dim + 2*z_size)

    h = fused[:, :latent_dim]                             # fc pre-activation
    gamma = misc[1:2, :latent_dim]
    beta = misc[2:3, :latent_dim]
    b_heads = misc[3:4, :z2]                              # [b_mu | b_var]

    # BatchNorm1d (training mode: batch mean, biased batch variance, eps=1e-5).
    mean = jnp.mean(h, axis=0, keepdims=True)
    hc = h - mean                                         # centered once, reused
    var = jnp.mean(hc * hc, axis=0, keepdims=True)
    h_act = jnp.tanh(gamma * (hc * jax.lax.rsqrt(var + BN_EPS)) + beta)

    # Fused output heads (1 MXU push): [mu | logvar]
    heads = (
        jnp.dot(h_act, w_heads_ref[...], preferred_element_type=jnp.float32)
        + b_heads
    )                                                     # (B, 2*z_size)

    # Single lane-dense output slab: [mu | logvar | mu_zgc | logvar_zgc]
    out_ref[...] = jnp.concatenate([heads, fused[:, latent_dim:]], axis=1)


def _pack_params(params, latent_dim, z_size):
    """Fuse / pack the 12 parameter tensors into 4 arrays for the kernel."""
    wide = latent_dim + 2 * z_size
    z2 = 2 * z_size
    f32 = jnp.float32

    # Widened input-side weights.
    w_in_si = jnp.concatenate(
        [params["w_fc_si"], params["w_mu_zgc"], params["w_var_zgc"]], axis=1
    ).astype(f32)                                            # (si_dim, wide)
    w_in_warm = jnp.concatenate(
        [params["w_fc_warm"], jnp.zeros((z_size, z2), f32)], axis=1
    ).astype(f32)                                            # (z_size, wide)

    # Fused head weight.
    w_heads = jnp.concatenate([params["w_mu"], params["w_var"]], axis=1).astype(f32)

    def pad_w(x):
        return jnp.pad(x.astype(f32), ((0, 0), (0, wide - x.shape[1])))

    misc = jnp.concatenate(
        [
            pad_w(jnp.concatenate(
                [jnp.zeros((1, latent_dim), f32),
                 params["b_mu_zgc"], params["b_var_zgc"]], axis=1)),     # row 0
            pad_w(params["bn_gamma"]),                                   # row 1
            pad_w(params["bn_beta"]),                                    # row 2
            pad_w(jnp.concatenate([params["b_mu"], params["b_var"]], axis=1)),  # row 3
        ],
        axis=0,
    )                                                        # (4, wide)

    return w_in_si, w_in_warm, w_heads, misc


def encoder_forward(warm, side_information, params):
    """Whole Encoder forward in a single Pallas kernel invocation."""
    B, z_size = warm.shape
    latent_dim = params["w_fc_si"].shape[1]

    w_in_si, w_in_warm, w_heads, misc = _pack_params(params, latent_dim, z_size)
    inputs = (side_information, warm, w_in_si, w_in_warm, w_heads, misc)

    def full_spec(arr):
        # single grid point -> whole array resident in VMEM
        return pl.BlockSpec(arr.shape, lambda: (0,) * arr.ndim)

    kernel = functools.partial(_encoder_kernel, latent_dim=latent_dim, z_size=z_size)

    out_slab = pl.pallas_call(
        kernel,
        out_shape=jax.ShapeDtypeStruct((B, 4 * z_size), jnp.float32),
        in_specs=[full_spec(a) for a in inputs],
        out_specs=pl.BlockSpec((B, 4 * z_size), lambda: (0, 0)),
    )(*inputs)

    mu = out_slab[:, 0 * z_size:1 * z_size]
    logvar = out_slab[:, 1 * z_size:2 * z_size]
    mu_zgc = out_slab[:, 2 * z_size:3 * z_size]
    logvar_zgc = out_slab[:, 3 * z_size:4 * z_size]
    return mu, logvar, mu_zgc, logvar_zgc


def init_params(key, latent_dim, z_size, si_dim):
    """Deterministic synthetic parameter initialization (shapes from __init__)."""
    keys = jax.random.split(key, 8)

    def lin(k, fan_in, fan_out):
        bound = 1.0 / jnp.sqrt(jnp.float32(fan_in))
        kw, kb = jax.random.split(k)
        w = jax.random.uniform(kw, (fan_in, fan_out), jnp.float32, -bound, bound)
        b = jax.random.uniform(kb, (1, fan_out), jnp.float32, -bound, bound)
        return w, b

    # fc linear (no bias), stored as (z_size + si_dim, latent_dim); cat order = [si, warm]
    fan_in_fc = z_size + si_dim
    bound = 1.0 / jnp.sqrt(jnp.float32(fan_in_fc))
    w_fc = jax.random.uniform(keys[0], (fan_in_fc, latent_dim), jnp.float32, -bound, bound)
    w_fc_si, w_fc_warm = w_fc[:si_dim], w_fc[si_dim:]

    w_mu, b_mu = lin(keys[1], latent_dim, z_size)
    w_var, b_var = lin(keys[2], latent_dim, z_size)
    w_mu_zgc, b_mu_zgc = lin(keys[3], si_dim, z_size)
    w_var_zgc, b_var_zgc = lin(keys[4], si_dim, z_size)

    return {
        "w_fc_si": w_fc_si, "w_fc_warm": w_fc_warm,
        "bn_gamma": jnp.ones((1, latent_dim), jnp.float32),   # BatchNorm1d default init
        "bn_beta": jnp.zeros((1, latent_dim), jnp.float32),
        "w_mu": w_mu, "b_mu": b_mu,
        "w_var": w_var, "b_var": b_var,
        "w_mu_zgc": w_mu_zgc, "b_mu_zgc": b_mu_zgc,
        "w_var_zgc": w_var_zgc, "b_var_zgc": b_var_zgc,
    }


def encoder_reference(warm, si, p):
    """Pure-JAX reference for correctness checking."""
    mu_zgc = si @ p["w_mu_zgc"] + p["b_mu_zgc"]
    logvar_zgc = si @ p["w_var_zgc"] + p["b_var_zgc"]
    h = si @ p["w_fc_si"] + warm @ p["w_fc_warm"]
    mean = jnp.mean(h, axis=0, keepdims=True)
    var = jnp.mean((h - mean) ** 2, axis=0, keepdims=True)
    h = jnp.tanh(p["bn_gamma"] * (h - mean) / jnp.sqrt(var + BN_EPS) + p["bn_beta"])
    mu = h @ p["w_mu"] + p["b_mu"]
    logvar = h @ p["w_var"] + p["b_var"]
    return mu, logvar, mu_zgc, logvar_zgc


if __name__ == "__main__":
    B, z_size, si_dim, latent_dim = 8, 16, 12, 32

    key = jax.random.PRNGKey(0)
    k_warm, k_si, k_params = jax.random.split(key, 3)
    warm = jax.random.normal(k_warm, (B, z_size), jnp.float32)
    side_information = jax.random.normal(k_si, (B, si_dim), jnp.float32)
    params = init_params(k_params, latent_dim, z_size, si_dim)

    outs = encoder_forward(warm, side_information, params)
    outs = jax.block_until_ready(outs)

    refs = encoder_reference(warm, side_information, params)
    for o, r in zip(outs, refs):
        assert o.shape == r.shape
        assert jnp.allclose(o, r, atol=1e-5, rtol=1e-5), "mismatch vs reference"

    print("KERNEL_OK")
</pallas_src>

<mosaic_0001>
module attributes {stable_mosaic.version = 11 : i64} {
  func.func @_encoder_kernel(%arg0: memref<8x12xf32, #tpu.memory_space<vmem>>, %arg1: memref<8x16xf32, #tpu.memory_space<vmem>>, %arg2: memref<12x64xf32, #tpu.memory_space<vmem>>, %arg3: memref<16x64xf32, #tpu.memory_space<vmem>>, %arg4: memref<32x32xf32, #tpu.memory_space<vmem>>, %arg5: memref<4x64xf32, #tpu.memory_space<vmem>>, %arg6: memref<8x64xf32, #tpu.memory_space<vmem>>) attributes {dimension_semantics = [], scalar_prefetch = 0 : i64, scratch_operands = 0 : i64, tpu.core_type = #tpu.core_type<tc>} {
    %c0 = arith.constant 0 : index
    %c0_0 = arith.constant 0 : index
    %0 = vector.load %arg0[%c0, %c0_0] : memref<8x12xf32, #tpu.memory_space<vmem>>, vector<8x12xf32>
    %c0_1 = arith.constant 0 : index
    %c0_2 = arith.constant 0 : index
    %1 = vector.load %arg1[%c0_1, %c0_2] : memref<8x16xf32, #tpu.memory_space<vmem>>, vector<8x16xf32>
    %c0_3 = arith.constant 0 : index
    %c0_4 = arith.constant 0 : index
    %2 = vector.load %arg5[%c0_3, %c0_4] : memref<4x64xf32, #tpu.memory_space<vmem>>, vector<4x64xf32>
    %c0_5 = arith.constant 0 : index
    %c0_6 = arith.constant 0 : index
    %3 = vector.load %arg2[%c0_5, %c0_6] : memref<12x64xf32, #tpu.memory_space<vmem>>, vector<12x64xf32>
    %cst = arith.constant dense<0.000000e+00> : vector<8x64xf32>
    %4 = tpu.matmul %0, %3, %cst {dimension_numbers = #tpu.dot_dimension_numbers<[1], [0], [0], [1], [0, 0, 1, 1], [], []>} : vector<8x12xf32>, vector<12x64xf32>, vector<8x64xf32> -> vector<8x64xf32>
    %c0_7 = arith.constant 0 : index
    %c0_8 = arith.constant 0 : index
    %5 = vector.load %arg3[%c0_7, %c0_8] : memref<16x64xf32, #tpu.memory_space<vmem>>, vector<16x64xf32>
    %cst_9 = arith.constant dense<0.000000e+00> : vector<8x64xf32>
    %6 = tpu.matmul %1, %5, %cst_9 {dimension_numbers = #tpu.dot_dimension_numbers<[1], [0], [0], [1], [0, 0, 1, 1], [], []>} : vector<8x16xf32>, vector<16x64xf32>, vector<8x64xf32> -> vector<8x64xf32>
    %7 = arith.addf %4, %6 : vector<8x64xf32>
    %8 = vector.extract_strided_slice %2 {offsets = [0, 0], sizes = [1, 64], strides = [1, 1]} : vector<4x64xf32> to vector<1x64xf32>
    %9 = vector.broadcast %8 : vector<1x64xf32> to vector<8x64xf32>
    %10 = arith.addf %7, %9 : vector<8x64xf32>
    %11 = vector.extract_strided_slice %10 {offsets = [0, 0], sizes = [8, 32], strides = [1, 1]} : vector<8x64xf32> to vector<8x32xf32>
    %12 = vector.extract_strided_slice %2 {offsets = [1, 0], sizes = [1, 32], strides = [1, 1]} : vector<4x64xf32> to vector<1x32xf32>
    %13 = vector.extract_strided_slice %2 {offsets = [2, 0], sizes = [1, 32], strides = [1, 1]} : vector<4x64xf32> to vector<1x32xf32>
    %14 = vector.extract_strided_slice %2 {offsets = [3, 0], sizes = [1, 32], strides = [1, 1]} : vector<4x64xf32> to vector<1x32xf32>
    %cst_10 = arith.constant dense<0.000000e+00> : vector<32xf32>
    %15 = vector.multi_reduction <add>, %11, %cst_10 [0] : vector<8x32xf32> to vector<32xf32>
    %16 = vector.shape_cast %15 : vector<32xf32> to vector<1x32xf32>
    %cst_11 = arith.constant 8.000000e+00 : f32
    %17 = vector.broadcast %cst_11 : f32 to vector<1x32xf32>
    %18 = arith.divf %16, %17 : vector<1x32xf32>
    %19 = vector.broadcast %18 : vector<1x32xf32> to vector<8x32xf32>
    %20 = arith.subf %11, %19 : vector<8x32xf32>
    %21 = arith.mulf %20, %20 : vector<8x32xf32>
    %cst_12 = arith.constant dense<0.000000e+00> : vector<32xf32>
    %22 = vector.multi_reduction <add>, %21, %cst_12 [0] : vector<8x32xf32> to vector<32xf32>
    %23 = vector.shape_cast %22 : vector<32xf32> to vector<1x32xf32>
    %cst_13 = arith.constant 8.000000e+00 : f32
    %24 = vector.broadcast %cst_13 : f32 to vector<1x32xf32>
    %25 = arith.divf %23, %24 : vector<1x32xf32>
    %cst_14 = arith.constant 9.99999974E-6 : f32
    %26 = vector.broadcast %cst_14 : f32 to vector<1x32xf32>
    %27 = arith.addf %25, %26 : vector<1x32xf32>
    %28 = math.rsqrt %27 : vector<1x32xf32>
    %29 = vector.broadcast %28 : vector<1x32xf32> to vector<8x32xf32>
    %30 = arith.mulf %20, %29 : vector<8x32xf32>
    %31 = vector.broadcast %12 : vector<1x32xf32> to vector<8x32xf32>
    %32 = arith.mulf %31, %30 : vector<8x32xf32>
    %33 = vector.broadcast %13 : vector<1x32xf32> to vector<8x32xf32>
    %34 = arith.addf %32, %33 : vector<8x32xf32>
    %35 = math.tanh %34 : vector<8x32xf32>
    %c0_15 = arith.constant 0 : index
    %c0_16 = arith.constant 0 : index
    %36 = vector.load %arg4[%c0_15, %c0_16] : memref<32x32xf32, #tpu.memory_space<vmem>>, vector<32x32xf32>
    %cst_17 = arith.constant dense<0.000000e+00> : vector<8x32xf32>
    %37 = tpu.matmul %35, %36, %cst_17 {dimension_numbers = #tpu.dot_dimension_numbers<[1], [0], [0], [1], [0, 0, 1, 1], [], []>} : vector<8x32xf32>, vector<32x32xf32>, vector<8x32xf32> -> vector<8x32xf32>
    %38 = vector.broadcast %14 : vector<1x32xf32> to vector<8x32xf32>
    %39 = arith.addf %37, %38 : vector<8x32xf32>
    %40 = vector.extract_strided_slice %10 {offsets = [0, 32], sizes = [8, 32], strides = [1, 1]} : vector<8x64xf32> to vector<8x32xf32>
    %41 = tpu.concatenate %39, %40 in 1 : vector<8x32xf32>, vector<8x32xf32> -> vector<8x64xf32>
    %c0_18 = arith.constant 0 : index
    %c0_19 = arith.constant 0 : index
    %42 = vector.load %arg6[%c0_18, %c0_19] : memref<8x64xf32, #tpu.memory_space<vmem>>, vector<8x64xf32>
    tpu.vector_store %arg6[%c0_18, %c0_19], %41 {strides = array<i32>} : memref<8x64xf32, #tpu.memory_space<vmem>>, vector<8x64xf32>,
    return
  }
}

</mosaic_0001>

<bundles_post_ra>
// kernel: tpu_custom_call.1
= control target key start
LH: loop header
LB: loop body
LE: loop exit
PB: predicated region body
PF: predicated region fallthrough
CT: control target
= control target key end

     0   :  { %11 = vsyncpa [#allocation3], 0  ;;  %s734_s0 = inlined_call_operand.hbm [shape: f32[8,12], index: 0, kind: input, shape index: {}]   ;;  %s735_s1 = inlined_call_operand.hbm [shape: f32[8,16], index: 1, kind: input, shape index: {}]   ;;  %s736_s2 = inlined_call_operand.hbm [shape: f32[12,64], index: 2, kind: input, shape index: {}]   ;;  %s737_s3 = inlined_call_operand.hbm [shape: f32[16,64], index: 3, kind: input, shape index: {}]   ;;  %s738_s4 = inlined_call_operand.hbm [shape: f32[32,32], index: 4, kind: input, shape index: {}]   ;;  %s739_s5 = inlined_call_operand.vmem [shape: f32[4,64], index: 5, kind: input, shape index: {}]   ;;  %s740_s6 = inlined_call_operand.hbm [shape: f32[8,64], index: 6, kind: output, shape index: {}]  }
   0x1   :  { %12 = vsyncpa [#allocation6], 0 }
   0x2   :  { %13 = vsyncpa [#allocation9], 0 }
   0x3   :  { %14 = vsyncpa [#allocation4], 0  ;;  %s596_s21 = smov [#allocation5]   ;;  %s456_s25 = scalar_lea.hbm %s735_s1, 128 }
   0x4   :  { %s31_s22 = sshll.u32 %s596_s21, 4  ;;  %p457_p0 = scmp.ne.s32.totalorder %s735_s1, %s456_s25  ;;  %s32_s22 = int_to_ptr.vmem [resolvable:$true] %s31_s22 }
   0x5   :  { %p460_p1 = scmp.lt.u32.totalorder %s456_s25, %s735_s1 }
   0x7   :  { %p462_p2 = pnand %p460_p1, %p457_p0 }
   0x9   :  { %465 = shalt.err (!%p462_p2)
}
   0xa   :  { %s466_s30 = scalar_lea.vmem %s32_s22, 128  ;;  %p471_p4 = scmp.lt.s32.totalorder %s32_s22, %s32_s22 }
   0xb   :  { %p467_p3 = scmp.ne.s32.totalorder %s32_s22, %s466_s30  ;;  %p472_p5 = scmp.lt.s32.totalorder %s466_s30, %s466_s30 }
   0xd   :  { %p473_p6 = por %p472_p5, %p471_p4 }
   0xf   :  { %p474_p7 = pnand %p473_p6, %p467_p3 }
  0x11   :  { %477 = shalt.err (!%p474_p7)
}
  0x12   :  { %34 = dma.hbm_to_vmem [thread:$0]  %s735_s1, 128, %s32_s22, [#allocation6]  }
  0x13   :  { %s597_s9 = smov [#allocation8]   ;;  %s598_s11 = smov [#allocation2]  }
  0x14   :  { %s52_s10 = sshll.u32 %s597_s9, 4  ;;  %s21_s12 = sshll.u32 %s598_s11, 4  ;;  %s53_s10 = int_to_ptr.vmem [resolvable:$true] %s52_s10  ;;  %s22_s12 = int_to_ptr.vmem [resolvable:$true] %s21_s12 }
  0x15   :  { %s478_s15 = scalar_lea.hbm %s737_s3, 256 }
  0x16   :  { %p479_p8 = scmp.ne.s32.totalorder %s737_s3, %s478_s15  ;;  %p482_p9 = scmp.lt.u32.totalorder %s478_s15, %s737_s3 }
  0x18   :  { %p484_p10 = pnand %p482_p9, %p479_p8 }
  0x1a   :  { %487 = shalt.err (!%p484_p10)
}
  0x1b   :  { %s488_s1 = scalar_lea.vmem %s53_s10, 256  ;;  %p493_p12 = scmp.lt.s32.totalorder %s53_s10, %s53_s10 }
  0x1c   :  { %p489_p11 = scmp.ne.s32.totalorder %s53_s10, %s488_s1  ;;  %p494_p13 = scmp.lt.s32.totalorder %s488_s1, %s488_s1 }
  0x1e   :  { %p495_p0 = por %p494_p13, %p493_p12 }
  0x20   :  { %p496_p1 = pnand %p495_p0, %p489_p11 }
  0x22   :  { %499 = shalt.err (!%p496_p1)
}
  0x23   :  { %s599_s20 = smov 128   ;;  %s600_s21 = smov 8  }
  0x24   :  { %58 = dma.hbm_to_vmem [thread:$0]  %s737_s3, 256, %s53_s10, [#allocation9], %s599_s20, %s599_s20, %s600_s21  }
  0x25   :  { %s500_s26 = scalar_lea.hbm %s734_s0, 128 }
  0x26   :  { %p501_p2 = scmp.ne.s32.totalorder %s734_s0, %s500_s26  ;;  %p504_p3 = scmp.lt.u32.totalorder %s500_s26, %s734_s0 }
  0x28   :  { %p506_p4 = pnand %p504_p3, %p501_p2 }
  0x2a   :  { %509 = shalt.err (!%p506_p4)
}
  0x2b   :  { %s510_s7 = scalar_lea.vmem %s22_s12, 128  ;;  %p515_p6 = scmp.lt.s32.totalorder %s22_s12, %s22_s12 }
  0x2c   :  { %p511_p5 = scmp.ne.s32.totalorder %s22_s12, %s510_s7  ;;  %p516_p7 = scmp.lt.s32.totalorder %s510_s7, %s510_s7 }
  0x2e   :  { %p517_p8 = por %p516_p7, %p515_p6 }
  0x30   :  { %p518_p9 = pnand %p517_p8, %p511_p5 }
  0x32   :  { %521 = shalt.err (!%p518_p9)
}
  0x33   :  { %24 = dma.hbm_to_vmem [thread:$0]  %s734_s0, 128, %s22_s12, [#allocation3]  }
  0x34   :  { %s601_s9 = smov [#allocation7]   ;;  %s602_s11 = smov [#allocation10]  }
  0x35   :  { %s40_s10 = sshll.u32 %s601_s9, 4  ;;  %s64_s13 = sshll.u32 %s602_s11, 4  ;;  %s41_s10 = int_to_ptr.vmem [resolvable:$true] %s40_s10  ;;  %s65_s13 = int_to_ptr.vmem [resolvable:$true] %s64_s13 }
  0x36   :  { %s522_s16 = scalar_lea.hbm %s736_s2, 256 }
  0x37   :  { %p523_p10 = scmp.ne.s32.totalorder %s736_s2, %s522_s16  ;;  %p526_p11 = scmp.lt.u32.totalorder %s522_s16, %s736_s2 }
  0x39   :  { %p528_p12 = pnand %p526_p11, %p523_p10 }
  0x3b   :  { %531 = shalt.err (!%p528_p12)
}
  0x3c   :  { %s532_s0 = scalar_lea.vmem %s41_s10, 256  ;;  %p537_p0 = scmp.lt.s32.totalorder %s41_s10, %s41_s10 }
  0x3d   :  { %p533_p13 = scmp.ne.s32.totalorder %s41_s10, %s532_s0  ;;  %p538_p1 = scmp.lt.s32.totalorder %s532_s0, %s532_s0 }
  0x3f   :  { %p539_p2 = por %p538_p1, %p537_p0 }
  0x41   :  { %p540_p3 = pnand %p539_p2, %p533_p13 }
  0x43   :  { %543 = shalt.err (!%p540_p3)
}
  0x44   :  { %46 = dma.hbm_to_vmem [thread:$0]  %s736_s2, 256, %s41_s10, [#allocation6], %s599_s20, %s599_s20, %s600_s21  }
  0x45   :  { %s544_s25 = scalar_lea.hbm %s738_s4, 512 }
  0x46   :  { %p545_p4 = scmp.ne.s32.totalorder %s738_s4, %s544_s25  ;;  %p548_p5 = scmp.lt.u32.totalorder %s544_s25, %s738_s4 }
  0x48   :  { %p550_p6 = pnand %p548_p5, %p545_p4 }
  0x4a   :  { %553 = shalt.err (!%p550_p6)
}
  0x4b   :  { %s554_s30 = scalar_lea.vmem %s65_s13, 512  ;;  %p559_p8 = scmp.lt.s32.totalorder %s65_s13, %s65_s13 }
  0x4c   :  { %p555_p7 = scmp.ne.s32.totalorder %s65_s13, %s554_s30  ;;  %p560_p9 = scmp.lt.s32.totalorder %s554_s30, %s554_s30 }
  0x4e   :  { %p561_p10 = por %p560_p9, %p559_p8 }
  0x50   :  { %p562_p11 = pnand %p561_p10, %p555_p7 }
  0x52   :  { %565 = shalt.err (!%p562_p11)
}
  0x53   :  { %70 = dma.hbm_to_vmem [thread:$0]  %s738_s4, 512, %s65_s13, [#allocation9], %s599_s20, %s599_s20, %s600_s21  }
  0x54   :  { %588 = dma.done.wait [#allocation3], 128  }
  0x55   :  { %589 = vsyncadd [#allocation3], 4294967168 }
  0x56   :  { %590 = dma.done.wait [#allocation6], 384  }
  0x57   :  { %591 = vsyncadd [#allocation6], 4294966912 }
  0x58   :  { %592 = dma.done.wait [#allocation9], 768  }
  0x59   :  { %593 = vsyncadd [#allocation9], 4294966528  ;;  %v603_v0 = vmov 0.0|0.0   ;;  %vm604_vm0 = vmmov 0   ;;  %v605_v1 = vmov 0.0   ;;  %v93_v2 = vld [vmem:[#allocation8] sm:$0xff]  ;;  %v247_v16 = vlaneseq }
  0x5a   :  { %427 = vmatprep.subr.bf16.mxu1 %v603_v0  ;;  %406 = vmatprep.mubr.msk.f32.mxu1 %vm604_vm0, %v605_v1  ;;  %v94_v3 = vld [vmem:[#allocation8 + $0x8] sm:$0xff]  ;;  %v91_v5 = vld [vmem:[#allocation7] sm:$0xff]  ;;  %v92_v6 = vld [vmem:[#allocation7 + $0x8] sm:$0xf]  ;;  %vm173_vm1 = vcmask 1043456   ;;  %vm95_vm2 = vcmask 130048  }
  0x5b   :  { %434 = vmatprep.subr.bf16.mxu0 %v603_v0  ;;  %424 = vmatprep.mubr.msk.f32.mxu0 %vm604_vm0, %v605_v1  ;;  %v428_v4 = vpack.c.bf16 %v94_v3, %v93_v2  ;;  %v89_v7 = vld [vmem:[#allocation5] sm:$0xff]  ;;  %v431_v8 = vpack.c.bf16 %v92_v6, %v91_v5  ;;  %vm606_vm3 = vmmov 1   ;;  %v88_v9 = vld [vmem:[#allocation2] sm:$0xff]  ;;  %vm169_vm5 = vcmask 97280   ;;  %v286_v10 = vld [vmem:[#allocation10] sm:$0xff] }
  0x5c   :  { %vm432_vm4 = vmpackc.low %vm173_vm1, %vm606_vm3  ;;  %v287_v11 = vld [vmem:[#allocation10 + $0x8] sm:$0xff]  ;;  %v288_v12 = vld [vmem:[#allocation10 + $0x10] sm:$0xff]  ;;  %v248_v17 = vshrl.u32 %v247_v16, 7  ;;  %vm252_vm6 = vcmask 261120   ;;  %vm368_vm7 = vcmask 523264  }
  0x5d   :  { %429 = vmatpush3.bf16.msra.mxu1 %v428_v4  ;;  %v435_v13 = vpack.c.bf16 %v287_v11, %v286_v10  ;;  %v289_v14 = vld [vmem:[#allocation10 + $0x18] sm:$0xff]  ;;  %v90_v20 = vld [vmem:[%s739_s5] sm:$0xf]  ;;  %s607_s5 = smov [#allocation11]  }
  0x5e   :  { %430 = vmatprep.subr.bf16.mxu1 %v603_v0  ;;  %v438_v15 = vpack.c.bf16 %v289_v14, %v288_v12  ;;  %v249_v18 = vsub.s32 0, %v248_v17  ;;  %v277_v46 = vsub.s32 1, %v248_v17  ;;  %v282_v47 = vsub.s32 2, %v248_v17  ;;  %s376_s21 = sshll.u32 %s607_s5, 4  ;;  %s377_s21 = int_to_ptr.vmem [resolvable:$true] %s376_s21 }
  0x5f   :  { %436 = vmatpush3.bf16.msra.mxu0 %v435_v13  ;;  %v292_v55 = vsub.s32 3, %v248_v17  ;;  %s566_s3 = scalar_lea.vmem %s377_s21, 128  ;;  %p571_p13 = scmp.lt.s32.totalorder %s377_s21, %s377_s21 }
  0x60   :  { %407 = vmatmul.mubr.msk.f32.vlgmr.msra.gmra.mrb[0].mxu1 %vm95_vm2, %v89_v7  ;;  %437 = vmatprep.subr.bf16.mxu0 %v603_v0  ;;  %v250_v22 = vrot.slane %v90_v20, %v249_v18  ;;  %v278_v48 = vrot.slane %v90_v20, %v277_v46  ;;  %v283_v50 = vrot.slane %v90_v20, %v282_v47  ;;  %p567_p12 = scmp.ne.s32.totalorder %s377_s21, %s566_s3  ;;  %p572_p0 = scmp.lt.s32.totalorder %s566_s3, %s566_s3 }
  0x61   :  { %433 = vmatpush3.bf16.msk.msra.mxu1 %vm432_vm4, %v431_v8  ;;  %413 = vmatprep.mubr.msk.f32.mxu1 %vm604_vm0, %v605_v1  ;;  %v293_v56 = vrot.slane %v90_v20, %v292_v55 }
  0x62   :  { %p573_p1 = por %p572_p0, %p571_p13 }
  0x63   :  { %439 = vmatpush3.bf16.msra.mxu0 %v438_v15 }
  0x64   :  { %414 = vmatmul.mubr.msk.f32.vlgmr.msra.gmra.mrb[2].mxu1 %vm169_vm5, %v88_v9  ;;  %p574_p2 = pnand %p573_p1, %p567_p12 }
 0x133   :  { %v165_v19 = vpop.f32.mrb[0].mxu1 }
 0x134   :  { %v408_v21 = vpop.f32.mrb[1].mxu1 }
 0x137   :  { %v243_v23 = vpop.f32.mrb[2].mxu1 }
 0x138   :  { %v244_v24 = vadd.f32 %v243_v23, %v165_v19  ;;  %v415_v25 = vpop.f32.mrb[3].mxu1 }
 0x13a   :  { %v251_v26 = vadd.f32 %v250_v22, %v244_v24 }
 0x13c   :  { %v253_v27 = vsel %vm252_vm6, %v251_v26, 0.0 }
 0x13d   :  { %v254_v28 = vrot.slane %v253_v27, 4 }
 0x13f   :  { %v255_v29 = vadd.f32 %v254_v28, %v253_v27 }
 0x141   :  { %v256_v30 = vrot.slane %v255_v29, 2 }
 0x143   :  { %v257_v31 = vadd.f32 %v256_v30, %v255_v29 }
 0x145   :  { %v258_v32 = vrot.slane %v257_v31, 1 }
 0x147   :  { %v259_v33 = vadd.f32 %v258_v32, %v257_v31 }
 0x149   :  { %v261_v34 = vmul.f32 0.125, %v259_v33 }
 0x14b   :  { %v262_v35 = vsub.f32 %v251_v26, %v261_v34 }
 0x14d   :  { %v263_v36 = vmul.f32 %v262_v35, %v262_v35 }
 0x14f   :  { %v264_v37 = vsel %vm252_vm6, %v263_v36, 0.0 }
 0x150   :  { %v265_v38 = vrot.slane %v264_v37, 4 }
 0x152   :  { %v266_v39 = vadd.f32 %v265_v38, %v264_v37 }
 0x154   :  { %v267_v40 = vrot.slane %v266_v39, 2 }
 0x156   :  { %v268_v41 = vadd.f32 %v267_v40, %v266_v39 }
 0x158   :  { %v269_v42 = vrot.slane %v268_v41, 1 }
 0x15a   :  { %v270_v43 = vadd.f32 %v269_v42, %v268_v41 }
 0x15c   :  { %v271_v44 = vmul.f32 0.125, %v270_v43 }
 0x15e   :  { %v272_v45 = vadd.f32 1e-05, %v271_v44 }
 0x160   :  { %452 = vrsqrt.f32 %v272_v45 }
 0x16a   :  { %v453_v49 = vpop.eup %452 }
 0x16b   :  { %v274_v51 = vmul.f32 %v453_v49, %v262_v35 }
 0x16d   :  { %v279_v52 = vmul.f32 %v278_v48, %v274_v51 }
 0x16f   :  { %v284_v53 = vadd.f32 %v283_v50, %v279_v52 }
 0x171   :  { %454 = vtanh.f32 %v284_v53 }
 0x17b   :  { %v455_v54 = vpop.eup %454 }
 0x17c   :  { %425 = vmatmul.mubr.msk.f32.vlgmr.msra.gmra.mrb[0].mxu0 %vm252_vm6, %v455_v54 }
 0x24f   :  { %v363_v57 = vpop.f32.mrb[0].mxu0 }
 0x250   :  { %v364_v58 = vadd.f32 %v363_v57, %v293_v56  ;;  %v426_v59 = vpop.f32.mrb[1].mxu0 }
 0x252   :  { %v367_v60 = vsel %vm252_vm6, %v364_v58, %v251_v26 }
 0x253   :  { %369 = vst.msk [vmem:[#allocation11] sm:$0xff] %vm368_vm7, %v367_v60 }
 0x254   :  { %577 = shalt.err (!%p574_p2)
}
 0x255   :  { %s578_s10 = scalar_lea.hbm %s740_s6, 128 }
 0x256   :  { %p579_p3 = scmp.ne.s32.totalorder %s740_s6, %s578_s10  ;;  %p582_p4 = scmp.lt.u32.totalorder %s578_s10, %s740_s6 }
 0x258   :  { %p584_p5 = pnand %p582_p4, %p579_p3 }
 0x25a   :  { %587 = shalt.err (!%p584_p5)
}
 0x25b   :  { %379 = dma.vmem_to_hbm [thread:$0]  %s377_s21, 128, %s740_s6, [#allocation4]  }
 0x25c   :  { %594 = dma.done.wait [#allocation4], 128  }
 0x25d   :  { %595 = vsyncadd [#allocation4], 4294967168 }
 0x25e   :  { %383 = vsyncpa [#allocation3], 1 }
 0x25f   :  { %384 = vsyncpa [#allocation6], 1 }
 0x260   :  { %385 = vsyncpa [#allocation9], 1 }
 0x261   :  { %386 = vsyncpa [#allocation4], 1 }

</bundles_post_ra>
